<compile_context>
chip_gen: v6e
topology: v6e:2x2x1
jax: 0.10.0
libtpu: 0.0.40
codegen_flags: <defaults>
</compile_context>

<pallas_src>
import math

import jax
import jax.numpy as jnp
from jax.experimental import pallas as pl
from jax.experimental.pallas import tpu as pltpu

_LANE = 128          # TPU lane width (last-dim granularity)
_TILE_CAP = 32768    # max lanes per spatial tile; block ≈ 384 KiB f32


def _pe_add_kernel(pe_ref, x_ref, o_ref):
    # pe_ref: (C, TILE) resident encoding tile; x_ref / o_ref: (1, C, TILE).
    o_ref[...] = x_ref[...] + pe_ref[...][None]


def _build_pe(height: int, width: int, dtype) -> jax.Array:
    """Builds the (3, H, W) positional-encoding buffer (matches PyTorch init)."""
    div_term = math.exp(0.0 * (-math.log(10000.0) / 3.0))  # == 1.0
    y_pos = jnp.broadcast_to(
        jnp.arange(height, dtype=jnp.float32)[:, None], (height, width)
    )
    x_pos = jnp.broadcast_to(
        jnp.arange(width, dtype=jnp.float32)[None, :], (height, width)
    )
    pe0 = jnp.sin(y_pos * div_term)
    pe1 = jnp.cos(x_pos * div_term)
    pe2 = jnp.sin((y_pos + x_pos) * div_term)
    return jnp.stack([pe0, pe1, pe2], axis=0).astype(dtype)  # (3, H, W)


def positional_encoding_2d(x: jax.Array) -> jax.Array:
    """Adds 2D positional encoding to x of shape (B, 3, H, W)."""
    B, C, H, W = x.shape
    assert C == 3, "Channel dimension must be 3."

    n = H * W
    # Lane-dense tile over the flattened spatial axis.
    tile = min(_TILE_CAP, pl.cdiv(n, _LANE) * _LANE)
    n_pad = pl.cdiv(n, tile) * tile
    n_tiles = n_pad // tile

    # Precompute pe once (in x's dtype so bf16 inputs stay bf16 end-to-end).
    pe = _build_pe(H, W, x.dtype).reshape(C, n)
    x_flat = x.reshape(B, C, n)
    if n_pad != n:
        pad = n_pad - n
        x_flat = jnp.pad(x_flat, ((0, 0), (0, 0), (0, pad)))
        pe = jnp.pad(pe, ((0, 0), (0, pad)))

    out = pl.pallas_call(
        _pe_add_kernel,
        out_shape=jax.ShapeDtypeStruct((B, C, n_pad), x.dtype),
        grid_spec=pltpu.PrefetchScalarGridSpec(
            num_scalar_prefetch=0,
            # Batch is the innermost axis: the pe block index is constant
            # across it, so the pe tile stays resident in VMEM (one DMA per
            # spatial tile, not per batch element).
            grid=(n_tiles, B),
            in_specs=[
                pl.BlockSpec((C, tile), lambda t, b: (0, t)),        # pe
                pl.BlockSpec((1, C, tile), lambda t, b: (b, 0, t)),  # x
            ],
            out_specs=pl.BlockSpec((1, C, tile), lambda t, b: (b, 0, t)),
        ),
        compiler_params=pltpu.CompilerParams(
            dimension_semantics=("parallel", "parallel"),
        ),
    )(pe, x_flat)

    if n_pad != n:
        out = out[:, :, :n]
    return out.reshape(B, C, H, W)


def _reference(x: jax.Array) -> jax.Array:
    _, _, H, W = x.shape
    pe = _build_pe(H, W, jnp.float32)
    return x + pe[None].astype(x.dtype)


if __name__ == "__main__":
    key = jax.random.PRNGKey(0)

    fwd = jax.jit(positional_encoding_2d)

    # Main test shape (C must be 3 per the module spec).
    B, C, H, W = 2, 3, 16, 16
    x = jax.random.normal(key, (B, C, H, W), dtype=jnp.float32)
    out = jax.block_until_ready(fwd(x))
    assert out.shape == (B, C, H, W)
    assert jnp.allclose(out, _reference(x), atol=1e-5, rtol=1e-5)

    # Non-128-multiple spatial size exercises the lane-padding path.
    x2 = jax.random.normal(jax.random.PRNGKey(1), (2, 3, 13, 20), jnp.float32)
    out2 = jax.block_until_ready(fwd(x2))
    assert out2.shape == x2.shape
    assert jnp.allclose(out2, _reference(x2), atol=1e-5, rtol=1e-5)

    print("KERNEL_OK")
</pallas_src>

<mosaic_0001>
module attributes {stable_mosaic.version = 11 : i64} {
  func.func @_pe_add_kernel(%arg0: i32, %arg1: i32, %arg2: memref<3x256xf32, #tpu.memory_space<vmem>>, %arg3: memref<1x3x256xf32, #tpu.memory_space<vmem>>, %arg4: memref<1x3x256xf32, #tpu.memory_space<vmem>>) attributes {dimension_semantics = [#tpu.dimension_semantics<parallel>, #tpu.dimension_semantics<parallel>], iteration_bounds = array<i64: 1, 2>, scalar_prefetch = 0 : i64, scratch_operands = 0 : i64, tpu.core_type = #tpu.core_type<tc>, window_params = [{transform_indices = @transform_0, window_bounds = array<i64: 3, 256>}, {transform_indices = @transform_1, window_bounds = array<i64: 1, 3, 256>}, {transform_indices = @transform_2, window_bounds = array<i64: 1, 3, 256>}]} {
    %c0 = arith.constant 0 : index
    %c0_0 = arith.constant 0 : index
    %c0_1 = arith.constant 0 : index
    %0 = vector.load %arg3[%c0, %c0_0, %c0_1] : memref<1x3x256xf32, #tpu.memory_space<vmem>>, vector<1x3x256xf32>
    %c0_2 = arith.constant 0 : index
    %c0_3 = arith.constant 0 : index
    %1 = vector.load %arg2[%c0_2, %c0_3] : memref<3x256xf32, #tpu.memory_space<vmem>>, vector<3x256xf32>
    %2 = vector.shape_cast %1 : vector<3x256xf32> to vector<1x3x256xf32>
    %3 = arith.addf %0, %2 : vector<1x3x256xf32>
    %c0_4 = arith.constant 0 : index
    %c0_5 = arith.constant 0 : index
    %c0_6 = arith.constant 0 : index
    %4 = vector.load %arg4[%c0_4, %c0_5, %c0_6] : memref<1x3x256xf32, #tpu.memory_space<vmem>>, vector<1x3x256xf32>
    tpu.vector_store %arg4[%c0_4, %c0_5, %c0_6], %3 {strides = array<i32>} : memref<1x3x256xf32, #tpu.memory_space<vmem>>, vector<1x3x256xf32>,
    return
  }
  func.func @transform_0(%arg0: i32, %arg1: i32) -> (i32, i32) {
    %c0_i32 = arith.constant 0 : i32
    %c0_i32_0 = arith.constant 0 : i32
    return %c0_i32, %arg0 : i32, i32
  }
  func.func @transform_1(%arg0: i32, %arg1: i32) -> (i32, i32, i32) {
    %c0_i32 = arith.constant 0 : i32
    %c0_i32_0 = arith.constant 0 : i32
    return %arg1, %c0_i32, %arg0 : i32, i32, i32
  }
  func.func @transform_2(%arg0: i32, %arg1: i32) -> (i32, i32, i32) {
    %c0_i32 = arith.constant 0 : i32
    %c0_i32_0 = arith.constant 0 : i32
    return %arg1, %c0_i32, %arg0 : i32, i32, i32
  }
}

</mosaic_0001>

<bundles_post_ra>
// kernel: positional_encoding_2d.1
= control target key start
LH: loop header
LB: loop body
LE: loop exit
PB: predicated region body
PF: predicated region fallthrough
CT: control target
= control target key end

     0   :  { %s388_s9 = smov 0   ;;  %s365_s10 = smov 0   ;;  %s402_s0 = inlined_call_operand.vmem [shape: f32[3,256], index: 0, kind: input, shape index: {}]   ;;  %s403_s1 = inlined_call_operand.vmem [shape: f32[2,3,256], index: 1, kind: input, shape index: {}]   ;;  %s404_s2 = inlined_call_operand.vmem [shape: f32[2,3,256], index: 2, kind: output, shape index: {}]  }
   0x1   :  { %s369_s11 = smov 0  }
   0x2 LB: > { %s21_s12 = sadd.s32 1, %s367_s10  ;;  %p316_p0 = scmp.ge.s32.totalorder %s371_s11, 1  ;;  %s371_s11 = sphi %s369_s11, %s12_s11   ;;  %s367_s10 = sphi %s365_s10, %s366_s10   ;;  %s363_s9 = sphi %s388_s9, %s405_s9  }
   0x3   : > { %p22_p1 = scmp.ge.s32.totalorder %s21_s12, 2  ;;  %p144_p2 = scmp.lt.s32.totalorder %s371_s11, 3 }
   0x5   : > { %s407_s12 = smov (%p22_p1, %s21_s12), 0  ;;  %p145_p3 = pnand %p316_p0, %p144_p2 }
   0x6   : > { %p186_p4 = scmp.lt.s32.totalorder (!%p145_p3), %s363_s9, 1 }
   0x7   : > { %148 = sbr.rel (%p145_p3) target bundleno = 19 (0x13), region = 28 }
   0xc   : > { %s409_s9 = smov (!%p186_p4, %s363_s9), 1  ;;  %v206_v0 = vld [vmem:[%s402_s0] sm:$0x77] }
   0xd   : > { %s323_s13 = sshll.u32 %s409_s9, 3 }
   0xe   : > { %s193_s18 = scalar_lea.vmem %s403_s1, %s323_s13  ;;  %s203_s21 = scalar_lea.vmem %s404_s2, %s323_s13 }
   0xf   : > { %v205_v1 = vld [vmem:[%s193_s18] sm:$0x77] }
  0x10   : > { %v207_v2 = vadd.f32 %v206_v0, %v205_v1 }
  0x12   : > { %208 = vst [vmem:[%s203_s21] sm:$0x77] %v207_v2 }
  0x13 PF: > { %s12_s11 = sadd.s32 1, %s371_s11   ;;  %s405_s9 = smov %s367_s10 }
  0x14   : > { %p9_p5 = scmp.ge.s32.totalorder %s12_s11, 4   ;;  %s366_s10 = smov %s407_s12  }
  0x16   :  { %11 = sbr.rel (!%p9_p5) target bundleno = 2 (0x2), region = 61 }

</bundles_post_ra>
